<compile_context>
chip_gen: v7x
topology: tpu7x:2x2x1
jax: 0.10.0
libtpu: 0.0.40
codegen_flags: <defaults>
</compile_context>

<pallas_src>
import jax
import jax.numpy as jnp
from jax import lax
from jax.experimental import pallas as pl
from jax.experimental.pallas import tpu as pltpu


def _linear_kernel(x_ref, w_ref, b_ref, o_ref):
    """Grid step (i, j, k):  o[i, j] (+)= x[i, k] @ w[j, k]^T, bias-initialized at k==0."""
    @pl.when(pl.program_id(2) == 0)
    def _():
        # Initialize the resident output block with the broadcast bias; the k-loop
        # then accumulates straight into it (no scratch accumulator, no epilogue).
        o_ref[...] = jnp.broadcast_to(b_ref[...], o_ref.shape).astype(o_ref.dtype)

    o_ref[...] += lax.dot_general(
        x_ref[...],                      # (tm, tk)
        w_ref[...],                      # (tn, tk)  -- weight kept un-transposed
        dimension_numbers=(((1,), (1,)), ((), ())),
        preferred_element_type=jnp.float32,
    ).astype(o_ref.dtype)


def _pick_tiles(B, D_out, D_in):
    """Adaptive tile sizes honoring the (8, 128) layout rule and K-divisibility."""
    # Batch tile (sublane axis of x / out): full extent when small, else 256 rows.
    tm = B if B <= 256 else 256
    # Output-feature tile (lane axis of out, sublane axis of w): full or 512 lanes.
    tn = D_out if D_out <= 512 else 512
    # Reduction tile (lane axis of x and w): must divide D_in exactly (or cover it)
    # so the padded region of a partial K block can never corrupt the accumulation.
    if D_in <= 2048:
        tk = D_in
    else:
        tk = D_in  # fallback: whole reduction in one block (always correct)
        for cand in (2048, 1536, 1024, 768, 512, 384, 256, 128):
            if D_in % cand == 0:
                tk = cand
                break
    return tm, tn, tk


@jax.jit
def projection_head_forward(x, w, b):
    """y = x @ w.T + b  (PyTorch nn.Linear convention), tiled Pallas TPU matmul.

    x: (B, D_in) float32
    w: (D_out, D_in) float32
    b: (D_out,) float32
    """
    B, D_in = x.shape
    D_out, D_in_w = w.shape
    assert D_in_w == D_in
    assert b.shape == (D_out,)

    tm, tn, tk = _pick_tiles(B, D_out, D_in)
    grid = (pl.cdiv(B, tm), pl.cdiv(D_out, tn), pl.cdiv(D_in, tk))

    b2 = b.reshape(1, D_out)

    # VMEM budget: double-buffered x / w / bias blocks + resident output block,
    # plus slack.  Never below the 32 MiB scoped default, capped at 40 MiB so the
    # request is safe on v7x's 64 MiB physical VMEM.
    est = 2 * (tm * tk + tn * tk + tn) * 4 + 2 * tm * tn * 4 + (2 << 20)
    vmem_limit = min(max(est, 32 * 1024 * 1024), 40 * 1024 * 1024)

    return pl.pallas_call(
        _linear_kernel,
        out_shape=jax.ShapeDtypeStruct((B, D_out), x.dtype),
        grid_spec=pltpu.PrefetchScalarGridSpec(
            num_scalar_prefetch=0,
            grid=grid,
            in_specs=[
                pl.BlockSpec((tm, tk), lambda i, j, k: (i, k)),  # x tile
                pl.BlockSpec((tn, tk), lambda i, j, k: (j, k)),  # w tile (no transpose)
                pl.BlockSpec((1, tn), lambda i, j, k: (0, j)),   # bias tile
            ],
            out_specs=pl.BlockSpec((tm, tn), lambda i, j, k: (i, j)),
        ),
        compiler_params=pltpu.CompilerParams(
            dimension_semantics=("parallel", "parallel", "arbitrary"),
            vmem_limit_bytes=vmem_limit,
        ),
    )(x, w, b2)


if __name__ == "__main__":
    # Small shapes consistent with ProjectionHead (Linear: input_dim -> output_dim).
    B, D_IN, D_OUT = 32, 512, 128

    key = jax.random.PRNGKey(0)
    kx, kw, kb = jax.random.split(key, 3)

    # Deterministic init (mimics PyTorch uniform(-1/sqrt(fan_in), 1/sqrt(fan_in))).
    bound = 1.0 / (D_IN ** 0.5)
    x = jax.random.normal(kx, (B, D_IN), dtype=jnp.float32)
    w = jax.random.uniform(kw, (D_OUT, D_IN), dtype=jnp.float32, minval=-bound, maxval=bound)
    b = jax.random.uniform(kb, (D_OUT,), dtype=jnp.float32, minval=-bound, maxval=bound)

    y = projection_head_forward(x, w, b)
    y = jax.block_until_ready(y)

    # Correctness check against a plain JAX reference.
    y_ref = x @ w.T + b
    assert y.shape == (B, D_OUT)
    assert jnp.allclose(y, y_ref, atol=1e-4, rtol=1e-4), "mismatch vs reference"

    print("KERNEL_OK")
</pallas_src>

<mosaic_0001>
module attributes {stable_mosaic.version = 11 : i64} {
  func.func @_linear_kernel(%arg0: i32, %arg1: i32, %arg2: i32, %arg3: memref<32x512xf32, #tpu.memory_space<vmem>>, %arg4: memref<128x512xf32, #tpu.memory_space<vmem>>, %arg5: memref<1x128xf32, #tpu.memory_space<vmem>>, %arg6: memref<32x128xf32, #tpu.memory_space<vmem>>) attributes {dimension_semantics = [#tpu.dimension_semantics<parallel>, #tpu.dimension_semantics<parallel>, #tpu.dimension_semantics<arbitrary>], iteration_bounds = array<i64: 1, 1, 1>, scalar_prefetch = 0 : i64, scratch_operands = 0 : i64, tpu.core_type = #tpu.core_type<tc>, window_params = [{transform_indices = @transform_0, window_bounds = array<i64: 32, 512>}, {transform_indices = @transform_1, window_bounds = array<i64: 128, 512>}, {transform_indices = @transform_2, window_bounds = array<i64: 1, 128>}, {transform_indices = @transform_3, window_bounds = array<i64: 32, 128>}]} {
    %c0_i32 = arith.constant 0 : i32
    %0 = arith.cmpi eq, %arg2, %c0_i32 : i32
    %1 = arith.extui %0 : i1 to i32
    %c0_i32_0 = arith.constant 0 : i32
    %2 = arith.cmpi ne, %1, %c0_i32_0 : i32
    scf.if %2 {
      %c0_8 = arith.constant 0 : index
      %c0_9 = arith.constant 0 : index
      %9 = vector.load %arg5[%c0_8, %c0_9] : memref<1x128xf32, #tpu.memory_space<vmem>>, vector<1x128xf32>
      %10 = vector.shape_cast %9 : vector<1x128xf32> to vector<1x128xf32>
      %11 = vector.broadcast %10 : vector<1x128xf32> to vector<32x128xf32>
      %c0_10 = arith.constant 0 : index
      %c0_11 = arith.constant 0 : index
      %12 = vector.load %arg6[%c0_10, %c0_11] : memref<32x128xf32, #tpu.memory_space<vmem>>, vector<32x128xf32>
      tpu.vector_store %arg6[%c0_10, %c0_11], %11 {strides = array<i32>} : memref<32x128xf32, #tpu.memory_space<vmem>>, vector<32x128xf32>,
    } else {
    }
    %c0 = arith.constant 0 : index
    %c0_1 = arith.constant 0 : index
    %3 = vector.load %arg6[%c0, %c0_1] : memref<32x128xf32, #tpu.memory_space<vmem>>, vector<32x128xf32>
    %c0_2 = arith.constant 0 : index
    %c0_3 = arith.constant 0 : index
    %4 = vector.load %arg3[%c0_2, %c0_3] : memref<32x512xf32, #tpu.memory_space<vmem>>, vector<32x512xf32>
    %c0_4 = arith.constant 0 : index
    %c0_5 = arith.constant 0 : index
    %5 = vector.load %arg4[%c0_4, %c0_5] : memref<128x512xf32, #tpu.memory_space<vmem>>, vector<128x512xf32>
    %cst = arith.constant dense<0.000000e+00> : vector<32x128xf32>
    %6 = tpu.matmul %4, %5, %cst {dimension_numbers = #tpu.dot_dimension_numbers<[1], [1], [0], [0], [0, 0, 1, 0], [], []>} : vector<32x512xf32>, vector<128x512xf32>, vector<32x128xf32> -> vector<32x128xf32>
    %7 = arith.addf %3, %6 : vector<32x128xf32>
    %c0_6 = arith.constant 0 : index
    %c0_7 = arith.constant 0 : index
    %8 = vector.load %arg6[%c0_6, %c0_7] : memref<32x128xf32, #tpu.memory_space<vmem>>, vector<32x128xf32>
    tpu.vector_store %arg6[%c0_6, %c0_7], %7 {strides = array<i32>} : memref<32x128xf32, #tpu.memory_space<vmem>>, vector<32x128xf32>,
    return
  }
  func.func @transform_0(%arg0: i32, %arg1: i32, %arg2: i32) -> (i32, i32) {
    %c0_i32 = arith.constant 0 : i32
    return %arg0, %arg2 : i32, i32
  }
  func.func @transform_1(%arg0: i32, %arg1: i32, %arg2: i32) -> (i32, i32) {
    %c0_i32 = arith.constant 0 : i32
    return %arg1, %arg2 : i32, i32
  }
  func.func @transform_2(%arg0: i32, %arg1: i32, %arg2: i32) -> (i32, i32) {
    %c0_i32 = arith.constant 0 : i32
    %c0_i32_0 = arith.constant 0 : i32
    return %c0_i32, %arg1 : i32, i32
  }
  func.func @transform_3(%arg0: i32, %arg1: i32, %arg2: i32) -> (i32, i32) {
    %c0_i32 = arith.constant 0 : i32
    return %arg0, %arg1 : i32, i32
  }
}

</mosaic_0001>

<bundles_post_ra>
// kernel: projection_head_forward.1
= control target key start
LH: loop header
LB: loop body
LE: loop exit
PB: predicated region body
PF: predicated region fallthrough
CT: control target
= control target key end

     0   :  { %8 = vsyncpa [#allocation3], 0  ;;  %s548_s0 = inlined_call_operand.hbm [shape: f32[32,512], index: 0, kind: input, shape index: {}]   ;;  %s549_s1 = inlined_call_operand.hbm [shape: f32[128,512], index: 1, kind: input, shape index: {}]   ;;  %s550_s2 = inlined_call_operand.vmem [shape: f32[1,128], index: 2, kind: input, shape index: {}]   ;;  %s551_s3 = inlined_call_operand.hbm [shape: f32[32,128], index: 3, kind: output, shape index: {}]  }
   0x1   :  { %9 = vsyncpa [#allocation6], 0 }
   0x2   :  { %10 = vsyncpa [#allocation4], 0  ;;  %s482_s12 = smov [#allocation2]   ;;  %s410_s16 = scalar_lea.hbm %s548_s0, 2048 }
   0x3   :  { %s16_s13 = sshll.u32 %s482_s12, 4  ;;  %p411_p0 = scmp.ne.s32.totalorder %s548_s0, %s410_s16  ;;  %s17_s13 = int_to_ptr.vmem [resolvable:$true] %s16_s13 }
   0x4   :  { %p414_p1 = scmp.lt.u32.totalorder %s410_s16, %s548_s0 }
   0x6   :  { %p416_p2 = pnand %p414_p1, %p411_p0 }
   0x8   :  { %419 = shalt.err (!%p416_p2)
}
   0x9   :  { %s420_s21 = scalar_lea.vmem %s17_s13, 2048  ;;  %p425_p4 = scmp.lt.s32.totalorder %s17_s13, %s17_s13 }
   0xa   :  { %p421_p3 = scmp.ne.s32.totalorder %s17_s13, %s420_s21  ;;  %p426_p5 = scmp.lt.s32.totalorder %s420_s21, %s420_s21 }
   0xc   :  { %p427_p6 = por %p426_p5, %p425_p4 }
   0xe   :  { %p428_p7 = pnand %p427_p6, %p421_p3 }
  0x10   :  { %431 = shalt.err (!%p428_p7)
}
  0x11   :  { %s483_s22 = smov 512   ;;  %s484_s23 = smov 32  }
  0x12   :  { %22 = dma.hbm_to_vmem [thread:$0]  %s548_s0, 2048, %s17_s13, [#allocation3], %s483_s22, %s483_s22, %s484_s23  }
  0x13   :  { %s485_s26 = smov [#allocation5]   ;;  %s432_s30 = scalar_lea.hbm %s549_s1, 8192 }
  0x14   :  { %s28_s27 = sshll.u32 %s485_s26, 4  ;;  %p433_p8 = scmp.ne.s32.totalorder %s549_s1, %s432_s30  ;;  %s29_s27 = int_to_ptr.vmem [resolvable:$true] %s28_s27 }
  0x15   :  { %p436_p9 = scmp.lt.u32.totalorder %s432_s30, %s549_s1 }
  0x17   :  { %p438_p10 = pnand %p436_p9, %p433_p8 }
  0x19   :  { %441 = shalt.err (!%p438_p10)
}
  0x1a   :  { %s442_s8 = scalar_lea.vmem %s29_s27, 8192  ;;  %p447_p12 = scmp.lt.s32.totalorder %s29_s27, %s29_s27 }
  0x1b   :  { %p443_p11 = scmp.ne.s32.totalorder %s29_s27, %s442_s8  ;;  %p448_p13 = scmp.lt.s32.totalorder %s442_s8, %s442_s8 }
  0x1d   :  { %p449_p0 = por %p448_p13, %p447_p12 }
  0x1f   :  { %p450_p1 = pnand %p449_p0, %p443_p11 }
  0x21   :  { %453 = shalt.err (!%p450_p1)
}
  0x22   :  { %34 = dma.hbm_to_vmem [thread:$0]  %s549_s1, 8192, %s29_s27, [#allocation6], %s483_s22, %s483_s22, %s484_s23  }
  0x23   :  { %476 = dma.done.wait [#allocation3], 2048  }
  0x24   :  { %477 = vsyncadd [#allocation3], 4294965248 }
  0x25   :  { %478 = dma.done.wait [#allocation6], 8192  }
  0x26   :  { %479 = vsyncadd [#allocation6], 4294959104  ;;  %v79_v0 = vld [vmem:[#allocation5 + $0x8] sm:$0xff]  ;;  %v81_v2 = vld [vmem:[#allocation5 + $0x18] sm:$0xff] }
  0x27   :  { %v83_v1 = vld [vmem:[#allocation5 + $0x28] sm:$0xff]  ;;  %v85_v4 = vld [vmem:[#allocation5 + $0x38] sm:$0xff]  ;;  %v78_v5 = vld [vmem:[#allocation5] sm:$0xff] }
  0x28   :  { %v339_v3 = vpack.c.bf16 %v83_v1, %v79_v0  ;;  %v82_v6 = vld [vmem:[#allocation5 + $0x20] sm:$0xff]  ;;  %v371_v7 = vpack.c.bf16 %v85_v4, %v81_v2  ;;  %v80_v9 = vld [vmem:[#allocation5 + $0x10] sm:$0xff]  ;;  %v87_v11 = vld [vmem:[#allocation5 + $0x48] sm:$0xff] }
  0x29   :  { %v341_v8 = vpack.c.bf16 %v82_v6, %v78_v5  ;;  %v84_v10 = vld [vmem:[#allocation5 + $0x30] sm:$0xff]  ;;  %v91_v13 = vld [vmem:[#allocation5 + $0x68] sm:$0xff]  ;;  %v89_v14 = vld [vmem:[#allocation5 + $0x58] sm:$0xff] }
  0x2a   :  { %340 = vmatprep.subr.bf16.mxu0 %v339_v3  ;;  %v373_v12 = vpack.c.bf16 %v84_v10, %v80_v9  ;;  %v93_v15 = vld [vmem:[#allocation5 + $0x78] sm:$0xff]  ;;  %372 = vmatprep.subr.bf16.mxu1 %v371_v7  ;;  %v343_v16 = vpack.c.bf16 %v91_v13, %v87_v11  ;;  %v86_v18 = vld [vmem:[#allocation5 + $0x40] sm:$0xff]  ;;  %v88_v20 = vld [vmem:[#allocation5 + $0x50] sm:$0xff] }
  0x2b   :  { %342 = vmatpush1.bf16.xpose.msra.mxu0 %v341_v8  ;;  %v375_v17 = vpack.c.bf16 %v93_v15, %v89_v14  ;;  %v90_v19 = vld [vmem:[#allocation5 + $0x60] sm:$0xff]  ;;  %v92_v21 = vld [vmem:[#allocation5 + $0x70] sm:$0xff]  ;;  %v95_v22 = vld [vmem:[#allocation5 + $0x88] sm:$0xff] }
  0x2c   :  { %374 = vmatpush1.bf16.xpose.msra.mxu1 %v373_v12  ;;  %344 = vmatprep.subr.bf16.mxu0 %v343_v16  ;;  %v99_v23 = vld [vmem:[#allocation5 + $0xa8] sm:$0xff]  ;;  %v97_v24 = vld [vmem:[#allocation5 + $0x98] sm:$0xff]  ;;  %v345_v26 = vpack.c.bf16 %v90_v19, %v86_v18  ;;  %v377_v27 = vpack.c.bf16 %v92_v21, %v88_v20  ;;  %v94_v30 = vld [vmem:[#allocation5 + $0x80] sm:$0xff] }
  0x2d   :  { %376 = vmatprep.subr.bf16.mxu1 %v375_v17  ;;  %v101_v25 = vld [vmem:[#allocation5 + $0xb8] sm:$0xff]  ;;  %v347_v28 = vpack.c.bf16 %v99_v23, %v95_v22  ;;  %v98_v31 = vld [vmem:[#allocation5 + $0xa0] sm:$0xff]  ;;  %v96_v32 = vld [vmem:[#allocation5 + $0x90] sm:$0xff] }
  0x2e   :  { %v379_v29 = vpack.c.bf16 %v101_v25, %v97_v24  ;;  %v100_v33 = vld [vmem:[#allocation5 + $0xb0] sm:$0xff]  ;;  %v103_v34 = vld [vmem:[#allocation5 + $0xc8] sm:$0xff]  ;;  %v105_v36 = vld [vmem:[#allocation5 + $0xd8] sm:$0xff]  ;;  %v349_v38 = vpack.c.bf16 %v98_v31, %v94_v30 }
  0x2f   :  { %v107_v35 = vld [vmem:[#allocation5 + $0xe8] sm:$0xff]  ;;  %v109_v37 = vld [vmem:[#allocation5 + $0xf8] sm:$0xff]  ;;  %v381_v39 = vpack.c.bf16 %v100_v33, %v96_v32  ;;  %v102_v42 = vld [vmem:[#allocation5 + $0xc0] sm:$0xff] }
  0x30   :  { %v351_v40 = vpack.c.bf16 %v107_v35, %v103_v34  ;;  %v383_v41 = vpack.c.bf16 %v109_v37, %v105_v36  ;;  %v106_v43 = vld [vmem:[#allocation5 + $0xe0] sm:$0xff]  ;;  %v104_v44 = vld [vmem:[#allocation5 + $0xd0] sm:$0xff]  ;;  %v63_v45 = vld [vmem:[#allocation2 + $0x8] sm:$0xff] }
  0x31   :  { %v65_v46 = vld [vmem:[#allocation2 + $0x18] sm:$0xff]  ;;  %v108_v47 = vld [vmem:[#allocation5 + $0xf0] sm:$0xff]  ;;  %v111_v48 = vld [vmem:[#allocation5 + $0x108] sm:$0xff]  ;;  %206 = vmatprep.mubr.f32.mxu0 %v63_v45  ;;  %v353_v52 = vpack.c.bf16 %v106_v43, %v102_v42 }
  0x32   :  { %v115_v49 = vld [vmem:[#allocation5 + $0x128] sm:$0xff]  ;;  %v113_v50 = vld [vmem:[#allocation5 + $0x118] sm:$0xff]  ;;  %291 = vmatprep.mubr.f32.mxu1 %v65_v46  ;;  %v385_v53 = vpack.c.bf16 %v108_v47, %v104_v44  ;;  %v110_v56 = vld [vmem:[#allocation5 + $0x100] sm:$0xff] }
  0x33   :  { %346 = vmatpush1.bf16.xpose.msra.mxu0 %v345_v26  ;;  %v117_v51 = vld [vmem:[#allocation5 + $0x138] sm:$0xff]  ;;  %v355_v54 = vpack.c.bf16 %v115_v49, %v111_v48  ;;  %v114_v57 = vld [vmem:[#allocation5 + $0x120] sm:$0xff]  ;;  %v112_v58 = vld [vmem:[#allocation5 + $0x110] sm:$0xff] }
  0x34   :  { %378 = vmatpush1.bf16.xpose.msra.mxu1 %v377_v27  ;;  %348 = vmatprep.subr.bf16.mxu0 %v347_v28  ;;  %v387_v55 = vpack.c.bf16 %v117_v51, %v113_v50  ;;  %v116_v59 = vld [vmem:[#allocation5 + $0x130] sm:$0xff]  ;;  %v119_v60 = vld [vmem:[#allocation5 + $0x148] sm:$0xff]  ;;  %v121_v62 = vld [vmem:[#allocation5 + $0x158] sm:$0xff]  ;;  %v357_v0 = vpack.c.bf16 %v114_v57, %v110_v56 }
  0x35   :  { %380 = vmatprep.subr.bf16.mxu1 %v379_v29  ;;  %v123_v61 = vld [vmem:[#allocation5 + $0x168] sm:$0xff]  ;;  %v125_v63 = vld [vmem:[#allocation5 + $0x178] sm:$0xff]  ;;  %v389_v1 = vpack.c.bf16 %v116_v59, %v112_v58  ;;  %v118_v4 = vld [vmem:[#allocation5 + $0x140] sm:$0xff] }
  0x36   :  { %v359_v2 = vpack.c.bf16 %v123_v61, %v119_v60  ;;  %v391_v3 = vpack.c.bf16 %v125_v63, %v121_v62  ;;  %v122_v5 = vld [vmem:[#allocation5 + $0x160] sm:$0xff]  ;;  %v120_v6 = vld [vmem:[#allocation5 + $0x150] sm:$0xff]  ;;  %v127_v8 = vld [vmem:[#allocation5 + $0x188] sm:$0xff] }
  0x37   :  { %v124_v7 = vld [vmem:[#allocation5 + $0x170] sm:$0xff]  ;;  %v131_v9 = vld [vmem:[#allocation5 + $0x1a8] sm:$0xff]  ;;  %v129_v10 = vld [vmem:[#allocation5 + $0x198] sm:$0xff]  ;;  %v361_v12 = vpack.c.bf16 %v122_v5, %v118_v4 }
  0x38   :  { %v133_v11 = vld [vmem:[#allocation5 + $0x1b8] sm:$0xff]  ;;  %v393_v13 = vpack.c.bf16 %v124_v7, %v120_v6  ;;  %v363_v14 = vpack.c.bf16 %v131_v9, %v127_v8  ;;  %v126_v16 = vld [vmem:[#allocation5 + $0x180] sm:$0xff]  ;;  %v128_v18 = vld [vmem:[#allocation5 + $0x190] sm:$0xff] }
  0x39   :  { %v395_v15 = vpack.c.bf16 %v133_v11, %v129_v10  ;;  %v130_v17 = vld [vmem:[#allocation5 + $0x1a0] sm:$0xff]  ;;  %v132_v19 = vld [vmem:[#allocation5 + $0x1b0] sm:$0xff]  ;;  %v135_v20 = vld [vmem:[#allocation5 + $0x1c8] sm:$0xff] }
  0x3a   :  { %v139_v21 = vld [vmem:[#allocation5 + $0x1e8] sm:$0xff]  ;;  %v137_v22 = vld [vmem:[#allocation5 + $0x1d8] sm:$0xff]  ;;  %v365_v24 = vpack.c.bf16 %v130_v17, %v126_v16  ;;  %v397_v25 = vpack.c.bf16 %v132_v19, %v128_v18  ;;  %v134_v28 = vld [vmem:[#allocation5 + $0x1c0] sm:$0xff] }
  0x3b   :  { %350 = vmatpush1.bf16.xpose.msra.mxu0 %v349_v38  ;;  %v141_v23 = vld [vmem:[#allocation5 + $0x1f8] sm:$0xff]  ;;  %v367_v26 = vpack.c.bf16 %v139_v21, %v135_v20  ;;  %v138_v29 = vld [vmem:[#allocation5 + $0x1e0] sm:$0xff]  ;;  %v136_v30 = vld [vmem:[#allocation5 + $0x1d0] sm:$0xff] }
  0x3c   :  { %382 = vmatpush1.bf16.xpose.msra.mxu1 %v381_v39  ;;  %352 = vmatprep.subr.bf16.mxu0 %v351_v40  ;;  %v399_v27 = vpack.c.bf16 %v141_v23, %v137_v22  ;;  %v140_v31 = vld [vmem:[#allocation5 + $0x1f0] sm:$0xff]  ;;  %v369_v32 = vpack.c.bf16 %v138_v29, %v134_v28  ;;  %v62_v34 = vld [vmem:[#allocation2] sm:$0xff]  ;;  %v67_v36 = vld [vmem:[#allocation2 + $0x28] sm:$0xff] }
  0x3d   :  { %384 = vmatprep.subr.bf16.mxu1 %v383_v41  ;;  %v401_v33 = vpack.c.bf16 %v140_v31, %v136_v30  ;;  %v64_v35 = vld [vmem:[#allocation2 + $0x10] sm:$0xff]  ;;  %v69_v37 = vld [vmem:[#allocation2 + $0x38] sm:$0xff]  ;;  %v66_v38 = vld [vmem:[#allocation2 + $0x20] sm:$0xff] }
  0x3e   :  { %v68_v39 = vld [vmem:[#allocation2 + $0x30] sm:$0xff]  ;;  %v71_v40 = vld [vmem:[#allocation2 + $0x48] sm:$0xff]  ;;  %v73_v41 = vld [vmem:[#allocation2 + $0x58] sm:$0xff] }
  0x3f   :  { %v70_v42 = vld [vmem:[#allocation2 + $0x40] sm:$0xff]  ;;  %v72_v43 = vld [vmem:[#allocation2 + $0x50] sm:$0xff]  ;;  %v75_v44 = vld [vmem:[#allocation2 + $0x68] sm:$0xff] }
  0x40   :  { %v77_v45 = vld [vmem:[#allocation2 + $0x78] sm:$0xff]  ;;  %v74_v46 = vld [vmem:[#allocation2 + $0x60] sm:$0xff]  ;;  %v76_v47 = vld [vmem:[#allocation2 + $0x70] sm:$0xff] }
  0x41   :  { %v338_v49 = vld [vmem:[%s550_s2] ss:$0 sm:$0xff]  ;;  %s486_s2 = smov [#allocation7]  }
  0x42   :  { %s325_s11 = sshll.u32 %s486_s2, 4  ;;  %s326_s11 = int_to_ptr.vmem [resolvable:$true] %s325_s11 }
  0x43   :  { %354 = vmatpush1.bf16.xpose.msra.mxu0 %v353_v52  ;;  %s454_s12 = scalar_lea.vmem %s326_s11, 512  ;;  %p459_p3 = scmp.lt.s32.totalorder %s326_s11, %s326_s11 }
  0x44   :  { %386 = vmatpush1.bf16.xpose.msra.mxu1 %v385_v53  ;;  %356 = vmatprep.subr.bf16.mxu0 %v355_v54  ;;  %p455_p2 = scmp.ne.s32.totalorder %s326_s11, %s454_s12  ;;  %p460_p4 = scmp.lt.s32.totalorder %s454_s12, %s454_s12 }
  0x45   :  { %388 = vmatprep.subr.bf16.mxu1 %v387_v55 }
  0x46   :  { %p461_p5 = por %p460_p4, %p459_p3 }
  0x48   :  { %p462_p6 = pnand %p461_p5, %p455_p2 }
  0x4b   :  { %358 = vmatpush1.bf16.xpose.msra.mxu0 %v357_v0 }
  0x4c   :  { %390 = vmatpush1.bf16.xpose.msra.mxu1 %v389_v1  ;;  %360 = vmatprep.subr.bf16.mxu0 %v359_v2 }
  0x4d   :  { %392 = vmatprep.subr.bf16.mxu1 %v391_v3 }
  0x53   :  { %362 = vmatpush1.bf16.xpose.msra.mxu0 %v361_v12 }
  0x54   :  { %394 = vmatpush1.bf16.xpose.msra.mxu1 %v393_v13  ;;  %364 = vmatprep.subr.bf16.mxu0 %v363_v14 }
  0x55   :  { %396 = vmatprep.subr.bf16.mxu1 %v395_v15 }
  0x5b   :  { %366 = vmatpush1.bf16.xpose.msra.mxu0 %v365_v24 }
  0x5c   :  { %398 = vmatpush1.bf16.xpose.msra.mxu1 %v397_v25  ;;  %368 = vmatprep.subr.bf16.mxu0 %v367_v26 }
  0x5d   :  { %400 = vmatprep.subr.bf16.mxu1 %v399_v27 }
  0x63   :  { %370 = vmatpush1.bf16.xpose.msra.mxu0 %v369_v32 }
  0x64   :  { %402 = vmatpush1.bf16.xpose.msra.mxu1 %v401_v33 }
  0x6a   :  { %207 = vmatmul.mubr.f32.vlgmr.msra.gmra.mrb[0].mxu0 %v62_v34 }
  0x6b   :  { %292 = vmatmul.mubr.f32.vlgmr.msra.gmra.mrb[0].mxu1 %v64_v35  ;;  %211 = vmatprep.mubr.f32.mxu0 %v67_v36 }
  0x6c   :  { %296 = vmatprep.mubr.f32.mxu1 %v69_v37 }
  0x6e   :  { %212 = vmatmul.mubr.f32.gmra.mrb[2].mxu0 %v66_v38 }
  0x6f   :  { %297 = vmatmul.mubr.f32.gmra.mrb[2].mxu1 %v68_v39  ;;  %216 = vmatprep.mubr.f32.mxu0 %v71_v40 }
  0x70   :  { %301 = vmatprep.mubr.f32.mxu1 %v73_v41 }
  0x72   :  { %217 = vmatmul.mubr.f32.gmra.mrb[4].mxu0 %v70_v42 }
  0x73   :  { %302 = vmatmul.mubr.f32.gmra.mrb[4].mxu1 %v72_v43  ;;  %221 = vmatprep.mubr.f32.mxu0 %v75_v44 }
  0x74   :  { %306 = vmatprep.mubr.f32.mxu1 %v77_v45 }
  0x76   :  { %222 = vmatmul.mubr.f32.gmra.mrb[6].mxu0 %v74_v46 }
  0x77   :  { %307 = vmatmul.mubr.f32.gmra.mrb[6].mxu1 %v76_v47 }
 0x13d   :  { %v208_v48 = vpop.f32.mrb[0].mxu0 }
 0x13e   :  { %v293_v50 = vpop.f32.mrb[0].mxu1  ;;  %v210_v51 = vpop.f32.mrb[1].mxu0 }
 0x13f   :  { %v294_v52 = vadd.f32 %v293_v50, %v208_v48  ;;  %v295_v53 = vpop.f32.mrb[1].mxu1 }
 0x141   :  { %v312_v54 = vadd.f32 %v338_v49, %v294_v52  ;;  %v213_v55 = vpop.f32.mrb[2].mxu0 }
 0x142   :  { %v298_v56 = vpop.f32.mrb[2].mxu1  ;;  %v215_v57 = vpop.f32.mrb[3].mxu0 }
 0x143   :  { %316 = vst [vmem:[#allocation7] sm:$0xff] %v312_v54  ;;  %v299_v58 = vadd.f32 %v298_v56, %v213_v55  ;;  %v300_v59 = vpop.f32.mrb[3].mxu1 }
 0x145   :  { %v313_v60 = vadd.f32 %v338_v49, %v299_v58  ;;  %v218_v61 = vpop.f32.mrb[4].mxu0 }
 0x146   :  { %v303_v62 = vpop.f32.mrb[4].mxu1  ;;  %v220_v63 = vpop.f32.mrb[5].mxu0 }
 0x147   :  { %317 = vst [vmem:[#allocation7 + $0x8] sm:$0xff] %v313_v60  ;;  %v304_v0 = vadd.f32 %v303_v62, %v218_v61  ;;  %v305_v1 = vpop.f32.mrb[5].mxu1 }
 0x149   :  { %v314_v2 = vadd.f32 %v338_v49, %v304_v0  ;;  %v223_v3 = vpop.f32.mrb[6].mxu0 }
 0x14a   :  { %v308_v4 = vpop.f32.mrb[6].mxu1  ;;  %v225_v5 = vpop.f32.mrb[7].mxu0 }
 0x14b   :  { %318 = vst [vmem:[#allocation7 + $0x10] sm:$0xff] %v314_v2  ;;  %v309_v6 = vadd.f32 %v308_v4, %v223_v3  ;;  %v310_v7 = vpop.f32.mrb[7].mxu1 }
 0x14d   :  { %v315_v8 = vadd.f32 %v338_v49, %v309_v6 }
 0x14f   :  { %319 = vst [vmem:[#allocation7 + $0x18] sm:$0xff] %v315_v8 }
 0x150   :  { %465 = shalt.err (!%p462_p6)
}
 0x151   :  { %s466_s15 = scalar_lea.hbm %s551_s3, 512 }
 0x152   :  { %p467_p7 = scmp.ne.s32.totalorder %s551_s3, %s466_s15  ;;  %p470_p8 = scmp.lt.u32.totalorder %s466_s15, %s551_s3 }
 0x154   :  { %p472_p9 = pnand %p470_p8, %p467_p7 }
 0x156   :  { %475 = shalt.err (!%p472_p9)
}
 0x157   :  { %s487_s20 = smov 128   ;;  %s488_s21 = smov 8  }
 0x158   :  { %331 = dma.vmem_to_hbm [thread:$0]  %s326_s11, 512, %s551_s3, [#allocation4], %s487_s20, %s487_s20, %s488_s21  }
 0x159   :  { %480 = dma.done.wait [#allocation4], 512  }
 0x15a   :  { %481 = vsyncadd [#allocation4], 4294966784 }
 0x15b   :  { %335 = vsyncpa [#allocation3], 1 }
 0x15c   :  { %336 = vsyncpa [#allocation6], 1 }
 0x15d   :  { %337 = vsyncpa [#allocation4], 1 }

</bundles_post_ra>
